<compile_context>
chip_gen: v7x
topology: tpu7x:2x2x1
jax: 0.10.0
libtpu: 0.0.40
codegen_flags: <defaults>
</compile_context>

<pallas_src>
import functools

import jax
import jax.numpy as jnp
from jax.experimental import pallas as pl
from jax.experimental.pallas import tpu as pltpu


# ------------------------- Fused kernel: conv (im2col matmul) + BN + ReLU -------------------------
def _fused_conv_bn_relu_kernel(x_ref, w_ref, b_ref, g_ref, beta_ref, mask_ref, o_ref, *, W, eps):
    # x_ref:    (N, Cin, HW)   bf16  input, NCHW with spatial flattened onto the lane axis (HW >= 128)
    # w_ref:    (Cout, 9*Cin)  bf16  conv weights, tap-major / ci-minor
    # b_ref:    (Cout, 1)      f32   conv bias
    # g_ref:    (Cout, 1)      f32   BN gamma
    # beta_ref: (Cout, 1)      f32   BN beta
    # mask_ref: (9, 1, HW)     f32   per-tap zero-padding validity masks (precomputed in wrapper)
    # o_ref:    (N, Cout, HW)  f32   output
    N, _Cin, HW = x_ref.shape

    w = w_ref[...]                   # (Cout, 9*Cin) bf16
    b = b_ref[...]                   # (Cout, 1) f32
    masks = mask_ref[...]            # (9, 1, HW) f32

    # ---- Phase 1: conv for every batch image (one MXU matmul each, K = 9*Cin) ----
    ys = []
    for n in range(N):               # static unroll; whole batch lives in one grid step
        xn = x_ref[n].astype(jnp.float32)              # (Cin, HW); mask math in f32 (v5e-friendly)
        cols = []
        for kh in range(3):
            for kw in range(3):
                t = kh * 3 + kw
                shift = (kh - 1) * W + (kw - 1)
                shifted = xn if shift == 0 else jnp.roll(xn, -shift, axis=1)
                cols.append(shifted * masks[t])        # zero out padded taps via hoisted mask
        # Built entirely in-register (no VMEM scratch round-trip), cast once to bf16 for the MXU.
        col = jnp.concatenate(cols, axis=0).astype(jnp.bfloat16)       # (9*Cin, HW)
        y = jnp.dot(w, col, preferred_element_type=jnp.float32) + b    # (Cout, HW) f32 accumulator
        ys.append(y)

    # ---- Phase 2: BN batch statistics over all N*HW positions (f32, before any downcast) ----
    inv_count = 1.0 / float(N * HW)
    total = ys[0].sum(axis=1, keepdims=True)
    for n in range(1, N):
        total = total + ys[n].sum(axis=1, keepdims=True)
    mean = total * inv_count                                           # (Cout, 1)

    css = jnp.zeros_like(mean)
    for n in range(N):
        d = ys[n] - mean
        css = css + jnp.sum(d * d, axis=1, keepdims=True)
    var = css * inv_count                                              # biased (training-mode BN)
    inv_std = jax.lax.rsqrt(var + eps)

    scale = g_ref[...] * inv_std                                       # (Cout, 1)
    shift = beta_ref[...] - mean * scale

    # ---- Phase 3: normalize + ReLU, lane-dense (Cout, HW) stores ----
    for n in range(N):
        o_ref[n] = jnp.maximum(ys[n] * scale + shift, 0.0)


# ----------------------------------------- Wrapper -----------------------------------------
def default_layer_forward(x_nchw, w_oihw, bias, gamma, beta, *, eps=1e-5):
    """Conv2d(3,1,1) -> BatchNorm2d (training batch stats) -> ReLU.  x: (N,Cin,H,W) -> (N,Cout,H,W)."""
    N, Cin, H, W = x_nchw.shape
    Cout = w_oihw.shape[0]
    HW = H * W

    # Free reshape: NCHW stays channel-major, spatial goes onto the lane axis (lane-dense, HW>=128).
    x_flat = x_nchw.reshape(N, Cin, HW).astype(jnp.bfloat16)       # bf16 halves the activation DMA
    # (Cout, Cin, 3, 3) -> (Cout, 3, 3, Cin) -> (Cout, 9*Cin): tap-major / ci-minor, bf16 for MXU.
    w_flat = jnp.transpose(w_oihw, (0, 2, 3, 1)).reshape(Cout, 9 * Cin).astype(jnp.bfloat16)
    b2 = bias.reshape(Cout, 1).astype(jnp.float32)
    g2 = gamma.reshape(Cout, 1).astype(jnp.float32)
    be2 = beta.reshape(Cout, 1).astype(jnp.float32)

    # Hoisted zero-padding validity masks: one (1, HW) row per tap, ~9*HW*4 B resident VMEM.
    hh = jnp.arange(H).reshape(H, 1)
    ww = jnp.arange(W).reshape(1, W)
    mask_rows = []
    for kh in range(3):
        for kw in range(3):
            dh, dw = kh - 1, kw - 1
            valid = (hh + dh >= 0) & (hh + dh < H) & (ww + dw >= 0) & (ww + dw < W)
            mask_rows.append(valid.reshape(1, HW))
    masks = jnp.stack(mask_rows, axis=0).astype(jnp.float32)        # (9, 1, HW)

    out = pl.pallas_call(
        functools.partial(_fused_conv_bn_relu_kernel, W=W, eps=eps),
        out_shape=jax.ShapeDtypeStruct((N, Cout, HW), jnp.float32),
        grid_spec=pltpu.PrefetchScalarGridSpec(
            num_scalar_prefetch=0,
            # Single grid step over the whole (small) batch: conv + BN stats + ReLU fully fused,
            # conv output never leaves VMEM and per-step pipeline overhead is paid exactly once.
            grid=(1,),
            in_specs=[
                pl.BlockSpec((N, Cin, HW), lambda i: (0, 0, 0)),
                pl.BlockSpec((Cout, 9 * Cin), lambda i: (0, 0)),
                pl.BlockSpec((Cout, 1), lambda i: (0, 0)),
                pl.BlockSpec((Cout, 1), lambda i: (0, 0)),
                pl.BlockSpec((Cout, 1), lambda i: (0, 0)),
                pl.BlockSpec((9, 1, HW), lambda i: (0, 0, 0)),
            ],
            out_specs=pl.BlockSpec((N, Cout, HW), lambda i: (0, 0, 0)),
        ),
        compiler_params=pltpu.CompilerParams(dimension_semantics=("arbitrary",)),
    )(x_flat, w_flat, b2, g2, be2, masks)

    # Free reshape back to NCHW (kernel layout is already channel-major).
    return out.reshape(N, Cout, H, W)


# ----------------------------- Pure-JAX reference for sanity check -----------------------------
def _reference(x_nchw, w_oihw, bias, gamma, beta, eps=1e-5):
    x_nhwc = jnp.transpose(x_nchw, (0, 2, 3, 1))
    w_hwio = jnp.transpose(w_oihw, (2, 3, 1, 0))
    conv = jax.lax.conv_general_dilated(
        x_nhwc, w_hwio, window_strides=(1, 1), padding=((1, 1), (1, 1)),
        dimension_numbers=("NHWC", "HWIO", "NHWC"),
        precision=jax.lax.Precision.HIGHEST) + bias
    mean = conv.mean(axis=(0, 1, 2))
    var = conv.var(axis=(0, 1, 2))          # biased, matches training-mode BN normalization
    y = gamma * (conv - mean) * jax.lax.rsqrt(var + eps) + beta
    y = jnp.maximum(y, 0.0)
    return jnp.transpose(y, (0, 3, 1, 2))


if __name__ == "__main__":
    N, Cin, Cout, H, W = 2, 4, 8, 16, 16

    key = jax.random.PRNGKey(0)
    k_x, k_w, k_b, k_g, k_be = jax.random.split(key, 5)

    x = jax.random.normal(k_x, (N, Cin, H, W), jnp.float32)           # NCHW, as PyTorch
    w = jax.random.normal(k_w, (Cout, Cin, 3, 3), jnp.float32) * 0.1  # Conv2d weight (OIHW)
    b = jax.random.normal(k_b, (Cout,), jnp.float32) * 0.1            # Conv2d bias
    gamma = 1.0 + 0.1 * jax.random.normal(k_g, (Cout,), jnp.float32)  # BN weight
    beta = 0.1 * jax.random.normal(k_be, (Cout,), jnp.float32)        # BN bias

    fwd = jax.jit(default_layer_forward)
    out = jax.block_until_ready(fwd(x, w, b, gamma, beta))

    ref = _reference(x, w, b, gamma, beta)
    assert out.shape == (N, Cout, H, W)
    # bf16 MXU inputs vs f32 reference -> tolerance a bit above f32 roundoff
    assert jnp.allclose(out, ref, atol=3e-2, rtol=3e-2), "mismatch vs reference"

    print("KERNEL_OK")
</pallas_src>

<mosaic_0001>
module attributes {stable_mosaic.version = 11 : i64} {
  func.func @_fused_conv_bn_relu_kernel(%arg0: i32, %arg1: memref<2x4x256xbf16, #tpu.memory_space<vmem>>, %arg2: memref<8x36xbf16, #tpu.memory_space<vmem>>, %arg3: memref<8x1xf32, #tpu.memory_space<vmem>>, %arg4: memref<8x1xf32, #tpu.memory_space<vmem>>, %arg5: memref<8x1xf32, #tpu.memory_space<vmem>>, %arg6: memref<9x1x256xf32, #tpu.memory_space<vmem>>, %arg7: memref<2x8x256xf32, #tpu.memory_space<vmem>>) attributes {dimension_semantics = [#tpu.dimension_semantics<arbitrary>], iteration_bounds = array<i64: 1>, scalar_prefetch = 0 : i64, scratch_operands = 0 : i64, tpu.core_type = #tpu.core_type<tc>, window_params = [{pipeline_mode = #tpu.pipeline_mode<synchronous>, transform_indices = @transform_0, window_bounds = array<i64: 2, 4, 256>}, {pipeline_mode = #tpu.pipeline_mode<synchronous>, transform_indices = @transform_1, window_bounds = array<i64: 8, 36>}, {pipeline_mode = #tpu.pipeline_mode<synchronous>, transform_indices = @transform_2, window_bounds = array<i64: 8, 1>}, {pipeline_mode = #tpu.pipeline_mode<synchronous>, transform_indices = @transform_3, window_bounds = array<i64: 8, 1>}, {pipeline_mode = #tpu.pipeline_mode<synchronous>, transform_indices = @transform_4, window_bounds = array<i64: 8, 1>}, {pipeline_mode = #tpu.pipeline_mode<synchronous>, transform_indices = @transform_5, window_bounds = array<i64: 9, 1, 256>}, {pipeline_mode = #tpu.pipeline_mode<synchronous>, transform_indices = @transform_6, window_bounds = array<i64: 2, 8, 256>}]} {
    %c0 = arith.constant 0 : index
    %c0_0 = arith.constant 0 : index
    %0 = vector.load %arg2[%c0, %c0_0] : memref<8x36xbf16, #tpu.memory_space<vmem>>, vector<8x36xbf16>
    %c0_1 = arith.constant 0 : index
    %c0_2 = arith.constant 0 : index
    %1 = vector.load %arg3[%c0_1, %c0_2] : memref<8x1xf32, #tpu.memory_space<vmem>>, vector<8x1xf32>
    %c0_3 = arith.constant 0 : index
    %c0_4 = arith.constant 0 : index
    %c0_5 = arith.constant 0 : index
    %2 = vector.load %arg6[%c0_3, %c0_4, %c0_5] : memref<9x1x256xf32, #tpu.memory_space<vmem>>, vector<9x1x256xf32>
    %c0_6 = arith.constant 0 : index
    %c0_7 = arith.constant 0 : index
    %c0_8 = arith.constant 0 : index
    %3 = vector.load %arg1[%c0_6, %c0_7, %c0_8] : memref<2x4x256xbf16, #tpu.memory_space<vmem>>, vector<1x4x256xbf16>
    %4 = vector.shape_cast %3 : vector<1x4x256xbf16> to vector<4x256xbf16>
    %5 = arith.extf %4 : vector<4x256xbf16> to vector<4x256xf32>
    %6 = vector.extract_strided_slice %5 {offsets = [0, 239], sizes = [4, 17], strides = [1, 1]} : vector<4x256xf32> to vector<4x17xf32>
    %7 = vector.extract_strided_slice %5 {offsets = [0, 0], sizes = [4, 239], strides = [1, 1]} : vector<4x256xf32> to vector<4x239xf32>
    %8 = tpu.concatenate %6, %7 in 1 : vector<4x17xf32>, vector<4x239xf32> -> vector<4x256xf32>
    %9 = vector.extract_strided_slice %2 {offsets = [0, 0, 0], sizes = [1, 1, 256], strides = [1, 1, 1]} : vector<9x1x256xf32> to vector<1x1x256xf32>
    %10 = vector.shape_cast %9 : vector<1x1x256xf32> to vector<1x256xf32>
    %11 = vector.broadcast %10 : vector<1x256xf32> to vector<4x256xf32>
    %12 = arith.mulf %8, %11 : vector<4x256xf32>
    %13 = vector.extract_strided_slice %5 {offsets = [0, 240], sizes = [4, 16], strides = [1, 1]} : vector<4x256xf32> to vector<4x16xf32>
    %14 = vector.extract_strided_slice %5 {offsets = [0, 0], sizes = [4, 240], strides = [1, 1]} : vector<4x256xf32> to vector<4x240xf32>
    %15 = tpu.concatenate %13, %14 in 1 : vector<4x16xf32>, vector<4x240xf32> -> vector<4x256xf32>
    %16 = vector.extract_strided_slice %2 {offsets = [1, 0, 0], sizes = [1, 1, 256], strides = [1, 1, 1]} : vector<9x1x256xf32> to vector<1x1x256xf32>
    %17 = vector.shape_cast %16 : vector<1x1x256xf32> to vector<1x256xf32>
    %18 = vector.broadcast %17 : vector<1x256xf32> to vector<4x256xf32>
    %19 = arith.mulf %15, %18 : vector<4x256xf32>
    %20 = vector.extract_strided_slice %5 {offsets = [0, 241], sizes = [4, 15], strides = [1, 1]} : vector<4x256xf32> to vector<4x15xf32>
    %21 = vector.extract_strided_slice %5 {offsets = [0, 0], sizes = [4, 241], strides = [1, 1]} : vector<4x256xf32> to vector<4x241xf32>
    %22 = tpu.concatenate %20, %21 in 1 : vector<4x15xf32>, vector<4x241xf32> -> vector<4x256xf32>
    %23 = vector.extract_strided_slice %2 {offsets = [2, 0, 0], sizes = [1, 1, 256], strides = [1, 1, 1]} : vector<9x1x256xf32> to vector<1x1x256xf32>
    %24 = vector.shape_cast %23 : vector<1x1x256xf32> to vector<1x256xf32>
    %25 = vector.broadcast %24 : vector<1x256xf32> to vector<4x256xf32>
    %26 = arith.mulf %22, %25 : vector<4x256xf32>
    %27 = vector.extract_strided_slice %5 {offsets = [0, 255], sizes = [4, 1], strides = [1, 1]} : vector<4x256xf32> to vector<4x1xf32>
    %28 = vector.extract_strided_slice %5 {offsets = [0, 0], sizes = [4, 255], strides = [1, 1]} : vector<4x256xf32> to vector<4x255xf32>
    %29 = tpu.concatenate %27, %28 in 1 : vector<4x1xf32>, vector<4x255xf32> -> vector<4x256xf32>
    %30 = vector.extract_strided_slice %2 {offsets = [3, 0, 0], sizes = [1, 1, 256], strides = [1, 1, 1]} : vector<9x1x256xf32> to vector<1x1x256xf32>
    %31 = vector.shape_cast %30 : vector<1x1x256xf32> to vector<1x256xf32>
    %32 = vector.broadcast %31 : vector<1x256xf32> to vector<4x256xf32>
    %33 = arith.mulf %29, %32 : vector<4x256xf32>
    %34 = vector.extract_strided_slice %2 {offsets = [4, 0, 0], sizes = [1, 1, 256], strides = [1, 1, 1]} : vector<9x1x256xf32> to vector<1x1x256xf32>
    %35 = vector.shape_cast %34 : vector<1x1x256xf32> to vector<1x256xf32>
    %36 = vector.broadcast %35 : vector<1x256xf32> to vector<4x256xf32>
    %37 = arith.mulf %5, %36 : vector<4x256xf32>
    %38 = vector.extract_strided_slice %5 {offsets = [0, 1], sizes = [4, 255], strides = [1, 1]} : vector<4x256xf32> to vector<4x255xf32>
    %39 = vector.extract_strided_slice %5 {offsets = [0, 0], sizes = [4, 1], strides = [1, 1]} : vector<4x256xf32> to vector<4x1xf32>
    %40 = tpu.concatenate %38, %39 in 1 : vector<4x255xf32>, vector<4x1xf32> -> vector<4x256xf32>
    %41 = vector.extract_strided_slice %2 {offsets = [5, 0, 0], sizes = [1, 1, 256], strides = [1, 1, 1]} : vector<9x1x256xf32> to vector<1x1x256xf32>
    %42 = vector.shape_cast %41 : vector<1x1x256xf32> to vector<1x256xf32>
    %43 = vector.broadcast %42 : vector<1x256xf32> to vector<4x256xf32>
    %44 = arith.mulf %40, %43 : vector<4x256xf32>
    %45 = vector.extract_strided_slice %5 {offsets = [0, 15], sizes = [4, 241], strides = [1, 1]} : vector<4x256xf32> to vector<4x241xf32>
    %46 = vector.extract_strided_slice %5 {offsets = [0, 0], sizes = [4, 15], strides = [1, 1]} : vector<4x256xf32> to vector<4x15xf32>
    %47 = tpu.concatenate %45, %46 in 1 : vector<4x241xf32>, vector<4x15xf32> -> vector<4x256xf32>
    %48 = vector.extract_strided_slice %2 {offsets = [6, 0, 0], sizes = [1, 1, 256], strides = [1, 1, 1]} : vector<9x1x256xf32> to vector<1x1x256xf32>
    %49 = vector.shape_cast %48 : vector<1x1x256xf32> to vector<1x256xf32>
    %50 = vector.broadcast %49 : vector<1x256xf32> to vector<4x256xf32>
    %51 = arith.mulf %47, %50 : vector<4x256xf32>
    %52 = vector.extract_strided_slice %5 {offsets = [0, 16], sizes = [4, 240], strides = [1, 1]} : vector<4x256xf32> to vector<4x240xf32>
    %53 = vector.extract_strided_slice %5 {offsets = [0, 0], sizes = [4, 16], strides = [1, 1]} : vector<4x256xf32> to vector<4x16xf32>
    %54 = tpu.concatenate %52, %53 in 1 : vector<4x240xf32>, vector<4x16xf32> -> vector<4x256xf32>
    %55 = vector.extract_strided_slice %2 {offsets = [7, 0, 0], sizes = [1, 1, 256], strides = [1, 1, 1]} : vector<9x1x256xf32> to vector<1x1x256xf32>
    %56 = vector.shape_cast %55 : vector<1x1x256xf32> to vector<1x256xf32>
    %57 = vector.broadcast %56 : vector<1x256xf32> to vector<4x256xf32>
    %58 = arith.mulf %54, %57 : vector<4x256xf32>
    %59 = vector.extract_strided_slice %5 {offsets = [0, 17], sizes = [4, 239], strides = [1, 1]} : vector<4x256xf32> to vector<4x239xf32>
    %60 = vector.extract_strided_slice %5 {offsets = [0, 0], sizes = [4, 17], strides = [1, 1]} : vector<4x256xf32> to vector<4x17xf32>
    %61 = tpu.concatenate %59, %60 in 1 : vector<4x239xf32>, vector<4x17xf32> -> vector<4x256xf32>
    %62 = vector.extract_strided_slice %2 {offsets = [8, 0, 0], sizes = [1, 1, 256], strides = [1, 1, 1]} : vector<9x1x256xf32> to vector<1x1x256xf32>
    %63 = vector.shape_cast %62 : vector<1x1x256xf32> to vector<1x256xf32>
    %64 = vector.broadcast %63 : vector<1x256xf32> to vector<4x256xf32>
    %65 = arith.mulf %61, %64 : vector<4x256xf32>
    %66 = tpu.concatenate %12, %19, %26, %33, %37, %44, %51, %58, %65 in 0 : vector<4x256xf32>, vector<4x256xf32>, vector<4x256xf32>, vector<4x256xf32>, vector<4x256xf32>, vector<4x256xf32>, vector<4x256xf32>, vector<4x256xf32>, vector<4x256xf32> -> vector<36x256xf32>
    %67 = arith.truncf %66 : vector<36x256xf32> to vector<36x256xbf16>
    %cst = arith.constant dense<0.000000e+00> : vector<8x256xf32>
    %68 = tpu.matmul %0, %67, %cst {dimension_numbers = #tpu.dot_dimension_numbers<[1], [0], [0], [1], [0, 0, 1, 1], [], []>} : vector<8x36xbf16>, vector<36x256xbf16>, vector<8x256xf32> -> vector<8x256xf32>
    %69 = vector.broadcast %1 : vector<8x1xf32> to vector<8x256xf32>
    %70 = arith.addf %68, %69 : vector<8x256xf32>
    %c1 = arith.constant 1 : index
    %c0_9 = arith.constant 0 : index
    %c0_10 = arith.constant 0 : index
    %71 = vector.load %arg1[%c1, %c0_9, %c0_10] : memref<2x4x256xbf16, #tpu.memory_space<vmem>>, vector<1x4x256xbf16>
    %72 = vector.shape_cast %71 : vector<1x4x256xbf16> to vector<4x256xbf16>
    %73 = arith.extf %72 : vector<4x256xbf16> to vector<4x256xf32>
    %74 = vector.extract_strided_slice %73 {offsets = [0, 239], sizes = [4, 17], strides = [1, 1]} : vector<4x256xf32> to vector<4x17xf32>
    %75 = vector.extract_strided_slice %73 {offsets = [0, 0], sizes = [4, 239], strides = [1, 1]} : vector<4x256xf32> to vector<4x239xf32>
    %76 = tpu.concatenate %74, %75 in 1 : vector<4x17xf32>, vector<4x239xf32> -> vector<4x256xf32>
    %77 = vector.extract_strided_slice %2 {offsets = [0, 0, 0], sizes = [1, 1, 256], strides = [1, 1, 1]} : vector<9x1x256xf32> to vector<1x1x256xf32>
    %78 = vector.shape_cast %77 : vector<1x1x256xf32> to vector<1x256xf32>
    %79 = vector.broadcast %78 : vector<1x256xf32> to vector<4x256xf32>
    %80 = arith.mulf %76, %79 : vector<4x256xf32>
    %81 = vector.extract_strided_slice %73 {offsets = [0, 240], sizes = [4, 16], strides = [1, 1]} : vector<4x256xf32> to vector<4x16xf32>
    %82 = vector.extract_strided_slice %73 {offsets = [0, 0], sizes = [4, 240], strides = [1, 1]} : vector<4x256xf32> to vector<4x240xf32>
    %83 = tpu.concatenate %81, %82 in 1 : vector<4x16xf32>, vector<4x240xf32> -> vector<4x256xf32>
    %84 = vector.extract_strided_slice %2 {offsets = [1, 0, 0], sizes = [1, 1, 256], strides = [1, 1, 1]} : vector<9x1x256xf32> to vector<1x1x256xf32>
    %85 = vector.shape_cast %84 : vector<1x1x256xf32> to vector<1x256xf32>
    %86 = vector.broadcast %85 : vector<1x256xf32> to vector<4x256xf32>
    %87 = arith.mulf %83, %86 : vector<4x256xf32>
    %88 = vector.extract_strided_slice %73 {offsets = [0, 241], sizes = [4, 15], strides = [1, 1]} : vector<4x256xf32> to vector<4x15xf32>
    %89 = vector.extract_strided_slice %73 {offsets = [0, 0], sizes = [4, 241], strides = [1, 1]} : vector<4x256xf32> to vector<4x241xf32>
    %90 = tpu.concatenate %88, %89 in 1 : vector<4x15xf32>, vector<4x241xf32> -> vector<4x256xf32>
    %91 = vector.extract_strided_slice %2 {offsets = [2, 0, 0], sizes = [1, 1, 256], strides = [1, 1, 1]} : vector<9x1x256xf32> to vector<1x1x256xf32>
    %92 = vector.shape_cast %91 : vector<1x1x256xf32> to vector<1x256xf32>
    %93 = vector.broadcast %92 : vector<1x256xf32> to vector<4x256xf32>
    %94 = arith.mulf %90, %93 : vector<4x256xf32>
    %95 = vector.extract_strided_slice %73 {offsets = [0, 255], sizes = [4, 1], strides = [1, 1]} : vector<4x256xf32> to vector<4x1xf32>
    %96 = vector.extract_strided_slice %73 {offsets = [0, 0], sizes = [4, 255], strides = [1, 1]} : vector<4x256xf32> to vector<4x255xf32>
    %97 = tpu.concatenate %95, %96 in 1 : vector<4x1xf32>, vector<4x255xf32> -> vector<4x256xf32>
    %98 = vector.extract_strided_slice %2 {offsets = [3, 0, 0], sizes = [1, 1, 256], strides = [1, 1, 1]} : vector<9x1x256xf32> to vector<1x1x256xf32>
    %99 = vector.shape_cast %98 : vector<1x1x256xf32> to vector<1x256xf32>
    %100 = vector.broadcast %99 : vector<1x256xf32> to vector<4x256xf32>
    %101 = arith.mulf %97, %100 : vector<4x256xf32>
    %102 = vector.extract_strided_slice %2 {offsets = [4, 0, 0], sizes = [1, 1, 256], strides = [1, 1, 1]} : vector<9x1x256xf32> to vector<1x1x256xf32>
    %103 = vector.shape_cast %102 : vector<1x1x256xf32> to vector<1x256xf32>
    %104 = vector.broadcast %103 : vector<1x256xf32> to vector<4x256xf32>
    %105 = arith.mulf %73, %104 : vector<4x256xf32>
    %106 = vector.extract_strided_slice %73 {offsets = [0, 1], sizes = [4, 255], strides = [1, 1]} : vector<4x256xf32> to vector<4x255xf32>
    %107 = vector.extract_strided_slice %73 {offsets = [0, 0], sizes = [4, 1], strides = [1, 1]} : vector<4x256xf32> to vector<4x1xf32>
    %108 = tpu.concatenate %106, %107 in 1 : vector<4x255xf32>, vector<4x1xf32> -> vector<4x256xf32>
    %109 = vector.extract_strided_slice %2 {offsets = [5, 0, 0], sizes = [1, 1, 256], strides = [1, 1, 1]} : vector<9x1x256xf32> to vector<1x1x256xf32>
    %110 = vector.shape_cast %109 : vector<1x1x256xf32> to vector<1x256xf32>
    %111 = vector.broadcast %110 : vector<1x256xf32> to vector<4x256xf32>
    %112 = arith.mulf %108, %111 : vector<4x256xf32>
    %113 = vector.extract_strided_slice %73 {offsets = [0, 15], sizes = [4, 241], strides = [1, 1]} : vector<4x256xf32> to vector<4x241xf32>
    %114 = vector.extract_strided_slice %73 {offsets = [0, 0], sizes = [4, 15], strides = [1, 1]} : vector<4x256xf32> to vector<4x15xf32>
    %115 = tpu.concatenate %113, %114 in 1 : vector<4x241xf32>, vector<4x15xf32> -> vector<4x256xf32>
    %116 = vector.extract_strided_slice %2 {offsets = [6, 0, 0], sizes = [1, 1, 256], strides = [1, 1, 1]} : vector<9x1x256xf32> to vector<1x1x256xf32>
    %117 = vector.shape_cast %116 : vector<1x1x256xf32> to vector<1x256xf32>
    %118 = vector.broadcast %117 : vector<1x256xf32> to vector<4x256xf32>
    %119 = arith.mulf %115, %118 : vector<4x256xf32>
    %120 = vector.extract_strided_slice %73 {offsets = [0, 16], sizes = [4, 240], strides = [1, 1]} : vector<4x256xf32> to vector<4x240xf32>
    %121 = vector.extract_strided_slice %73 {offsets = [0, 0], sizes = [4, 16], strides = [1, 1]} : vector<4x256xf32> to vector<4x16xf32>
    %122 = tpu.concatenate %120, %121 in 1 : vector<4x240xf32>, vector<4x16xf32> -> vector<4x256xf32>
    %123 = vector.extract_strided_slice %2 {offsets = [7, 0, 0], sizes = [1, 1, 256], strides = [1, 1, 1]} : vector<9x1x256xf32> to vector<1x1x256xf32>
    %124 = vector.shape_cast %123 : vector<1x1x256xf32> to vector<1x256xf32>
    %125 = vector.broadcast %124 : vector<1x256xf32> to vector<4x256xf32>
    %126 = arith.mulf %122, %125 : vector<4x256xf32>
    %127 = vector.extract_strided_slice %73 {offsets = [0, 17], sizes = [4, 239], strides = [1, 1]} : vector<4x256xf32> to vector<4x239xf32>
    %128 = vector.extract_strided_slice %73 {offsets = [0, 0], sizes = [4, 17], strides = [1, 1]} : vector<4x256xf32> to vector<4x17xf32>
    %129 = tpu.concatenate %127, %128 in 1 : vector<4x239xf32>, vector<4x17xf32> -> vector<4x256xf32>
    %130 = vector.extract_strided_slice %2 {offsets = [8, 0, 0], sizes = [1, 1, 256], strides = [1, 1, 1]} : vector<9x1x256xf32> to vector<1x1x256xf32>
    %131 = vector.shape_cast %130 : vector<1x1x256xf32> to vector<1x256xf32>
    %132 = vector.broadcast %131 : vector<1x256xf32> to vector<4x256xf32>
    %133 = arith.mulf %129, %132 : vector<4x256xf32>
    %134 = tpu.concatenate %80, %87, %94, %101, %105, %112, %119, %126, %133 in 0 : vector<4x256xf32>, vector<4x256xf32>, vector<4x256xf32>, vector<4x256xf32>, vector<4x256xf32>, vector<4x256xf32>, vector<4x256xf32>, vector<4x256xf32>, vector<4x256xf32> -> vector<36x256xf32>
    %135 = arith.truncf %134 : vector<36x256xf32> to vector<36x256xbf16>
    %cst_11 = arith.constant dense<0.000000e+00> : vector<8x256xf32>
    %136 = tpu.matmul %0, %135, %cst_11 {dimension_numbers = #tpu.dot_dimension_numbers<[1], [0], [0], [1], [0, 0, 1, 1], [], []>} : vector<8x36xbf16>, vector<36x256xbf16>, vector<8x256xf32> -> vector<8x256xf32>
    %137 = vector.broadcast %1 : vector<8x1xf32> to vector<8x256xf32>
    %138 = arith.addf %136, %137 : vector<8x256xf32>
    %cst_12 = arith.constant dense<0.000000e+00> : vector<8xf32>
    %139 = vector.multi_reduction <add>, %70, %cst_12 [1] : vector<8x256xf32> to vector<8xf32>
    %140 = vector.shape_cast %139 : vector<8xf32> to vector<8x1xf32>
    %cst_13 = arith.constant dense<0.000000e+00> : vector<8xf32>
    %141 = vector.multi_reduction <add>, %138, %cst_13 [1] : vector<8x256xf32> to vector<8xf32>
    %142 = vector.shape_cast %141 : vector<8xf32> to vector<8x1xf32>
    %143 = arith.addf %140, %142 : vector<8x1xf32>
    %cst_14 = arith.constant 0.001953125 : f32
    %144 = vector.broadcast %cst_14 : f32 to vector<8x1xf32>
    %145 = arith.mulf %143, %144 : vector<8x1xf32>
    %cst_15 = arith.constant 0.000000e+00 : f32
    %146 = vector.broadcast %cst_15 : f32 to vector<8x1xf32>
    %147 = vector.broadcast %145 : vector<8x1xf32> to vector<8x256xf32>
    %148 = arith.subf %70, %147 : vector<8x256xf32>
    %149 = arith.mulf %148, %148 : vector<8x256xf32>
    %cst_16 = arith.constant dense<0.000000e+00> : vector<8xf32>
    %150 = vector.multi_reduction <add>, %149, %cst_16 [1] : vector<8x256xf32> to vector<8xf32>
    %151 = vector.shape_cast %150 : vector<8xf32> to vector<8x1xf32>
    %152 = arith.addf %146, %151 : vector<8x1xf32>
    %153 = vector.broadcast %145 : vector<8x1xf32> to vector<8x256xf32>
    %154 = arith.subf %138, %153 : vector<8x256xf32>
    %155 = arith.mulf %154, %154 : vector<8x256xf32>
    %cst_17 = arith.constant dense<0.000000e+00> : vector<8xf32>
    %156 = vector.multi_reduction <add>, %155, %cst_17 [1] : vector<8x256xf32> to vector<8xf32>
    %157 = vector.shape_cast %156 : vector<8xf32> to vector<8x1xf32>
    %158 = arith.addf %152, %157 : vector<8x1xf32>
    %cst_18 = arith.constant 0.001953125 : f32
    %159 = vector.broadcast %cst_18 : f32 to vector<8x1xf32>
    %160 = arith.mulf %158, %159 : vector<8x1xf32>
    %cst_19 = arith.constant 9.99999974E-6 : f32
    %161 = vector.broadcast %cst_19 : f32 to vector<8x1xf32>
    %162 = arith.addf %160, %161 : vector<8x1xf32>
    %163 = math.rsqrt %162 : vector<8x1xf32>
    %c0_20 = arith.constant 0 : index
    %c0_21 = arith.constant 0 : index
    %164 = vector.load %arg4[%c0_20, %c0_21] : memref<8x1xf32, #tpu.memory_space<vmem>>, vector<8x1xf32>
    %165 = arith.mulf %164, %163 : vector<8x1xf32>
    %c0_22 = arith.constant 0 : index
    %c0_23 = arith.constant 0 : index
    %166 = vector.load %arg5[%c0_22, %c0_23] : memref<8x1xf32, #tpu.memory_space<vmem>>, vector<8x1xf32>
    %167 = arith.mulf %145, %165 : vector<8x1xf32>
    %168 = arith.subf %166, %167 : vector<8x1xf32>
    %169 = vector.broadcast %165 : vector<8x1xf32> to vector<8x256xf32>
    %170 = arith.mulf %70, %169 : vector<8x256xf32>
    %171 = vector.broadcast %168 : vector<8x1xf32> to vector<8x256xf32>
    %172 = arith.addf %170, %171 : vector<8x256xf32>
    %cst_24 = arith.constant 0.000000e+00 : f32
    %173 = vector.broadcast %cst_24 : f32 to vector<8x256xf32>
    %174 = arith.maximumf %172, %173 : vector<8x256xf32>
    %c0_25 = arith.constant 0 : index
    %c0_26 = arith.constant 0 : index
    %c0_27 = arith.constant 0 : index
    %175 = vector.load %arg7[%c0_25, %c0_26, %c0_27] : memref<2x8x256xf32, #tpu.memory_space<vmem>>, vector<1x8x256xf32>
    %176 = vector.shape_cast %175 : vector<1x8x256xf32> to vector<8x256xf32>
    %177 = vector.shape_cast %174 : vector<8x256xf32> to vector<1x8x256xf32>
    tpu.vector_store %arg7[%c0_25, %c0_26, %c0_27], %177 {strides = array<i32>} : memref<2x8x256xf32, #tpu.memory_space<vmem>>, vector<1x8x256xf32>,
    %178 = vector.broadcast %165 : vector<8x1xf32> to vector<8x256xf32>
    %179 = arith.mulf %138, %178 : vector<8x256xf32>
    %180 = vector.broadcast %168 : vector<8x1xf32> to vector<8x256xf32>
    %181 = arith.addf %179, %180 : vector<8x256xf32>
    %cst_28 = arith.constant 0.000000e+00 : f32
    %182 = vector.broadcast %cst_28 : f32 to vector<8x256xf32>
    %183 = arith.maximumf %181, %182 : vector<8x256xf32>
    %c1_29 = arith.constant 1 : index
    %c0_30 = arith.constant 0 : index
    %c0_31 = arith.constant 0 : index
    %184 = vector.load %arg7[%c1_29, %c0_30, %c0_31] : memref<2x8x256xf32, #tpu.memory_space<vmem>>, vector<1x8x256xf32>
    %185 = vector.shape_cast %184 : vector<1x8x256xf32> to vector<8x256xf32>
    %186 = vector.shape_cast %183 : vector<8x256xf32> to vector<1x8x256xf32>
    tpu.vector_store %arg7[%c1_29, %c0_30, %c0_31], %186 {strides = array<i32>} : memref<2x8x256xf32, #tpu.memory_space<vmem>>, vector<1x8x256xf32>,
    return
  }
  func.func @transform_0(%arg0: i32) -> (i32, i32, i32) {
    %c0_i32 = arith.constant 0 : i32
    %c0_i32_0 = arith.constant 0 : i32
    %c0_i32_1 = arith.constant 0 : i32
    %c0_i32_2 = arith.constant 0 : i32
    return %c0_i32, %c0_i32_0, %c0_i32_1 : i32, i32, i32
  }
  func.func @transform_1(%arg0: i32) -> (i32, i32) {
    %c0_i32 = arith.constant 0 : i32
    %c0_i32_0 = arith.constant 0 : i32
    %c0_i32_1 = arith.constant 0 : i32
    return %c0_i32, %c0_i32_0 : i32, i32
  }
  func.func @transform_2(%arg0: i32) -> (i32, i32) {
    %c0_i32 = arith.constant 0 : i32
    %c0_i32_0 = arith.constant 0 : i32
    %c0_i32_1 = arith.constant 0 : i32
    return %c0_i32, %c0_i32_0 : i32, i32
  }
  func.func @transform_3(%arg0: i32) -> (i32, i32) {
    %c0_i32 = arith.constant 0 : i32
    %c0_i32_0 = arith.constant 0 : i32
    %c0_i32_1 = arith.constant 0 : i32
    return %c0_i32, %c0_i32_0 : i32, i32
  }
  func.func @transform_4(%arg0: i32) -> (i32, i32) {
    %c0_i32 = arith.constant 0 : i32
    %c0_i32_0 = arith.constant 0 : i32
    %c0_i32_1 = arith.constant 0 : i32
    return %c0_i32, %c0_i32_0 : i32, i32
  }
  func.func @transform_5(%arg0: i32) -> (i32, i32, i32) {
    %c0_i32 = arith.constant 0 : i32
    %c0_i32_0 = arith.constant 0 : i32
    %c0_i32_1 = arith.constant 0 : i32
    %c0_i32_2 = arith.constant 0 : i32
    return %c0_i32, %c0_i32_0, %c0_i32_1 : i32, i32, i32
  }
  func.func @transform_6(%arg0: i32) -> (i32, i32, i32) {
    %c0_i32 = arith.constant 0 : i32
    %c0_i32_0 = arith.constant 0 : i32
    %c0_i32_1 = arith.constant 0 : i32
    %c0_i32_2 = arith.constant 0 : i32
    return %c0_i32, %c0_i32_0, %c0_i32_1 : i32, i32, i32
  }
}

</mosaic_0001>

<bundles_post_ra>
// kernel: default_layer_forward.1
= control target key start
LH: loop header
LB: loop body
LE: loop exit
PB: predicated region body
PF: predicated region fallthrough
CT: control target
= control target key end

     0   :  { %s679_s23 = smov 16   ;;  %s680_s24 = smov 1   ;;  %v687_v9 = vmov 0   ;;  %v50_v11 = vlaneseq  ;;  %vm67_vm0 = vcmask 130048   ;;  %vm113_vm1 = vcmask 7168   ;;  %s920_s0 = inlined_call_operand.vmem [shape: bf16[2,4,256], index: 0, kind: input, shape index: {}]   ;;  %s921_s2 = inlined_call_operand.vmem [shape: f32[8,1], index: 2, kind: input, shape index: {}]   ;;  %s922_s5 = inlined_call_operand.vmem [shape: f32[9,1,256], index: 5, kind: input, shape index: {}]   ;;  %s923_s1 = inlined_call_operand.vmem [shape: bf16[8,36], index: 1, kind: input, shape index: {}]   ;;  %s924_s3 = inlined_call_operand.vmem [shape: f32[8,1], index: 3, kind: input, shape index: {}]   ;;  %s925_s4 = inlined_call_operand.vmem [shape: f32[8,1], index: 4, kind: input, shape index: {}]   ;;  %s926_s6 = inlined_call_operand.vmem [shape: f32[2,8,256], index: 6, kind: output, shape index: {}]  }
   0x1   :  { %v581_v0 = vld [vmem:[%s920_s0] sm:$0xff]   ;;  %s681_s0 = smov 15   ;;  %s682_s25 = smov 17   ;;  %325 = vmatprep.mubr.bf16.mxu0 %v687_v9  ;;  %507 = vmatprep.mubr.bf16.mxu1 %v687_v9  ;;  %v30_v13 = vld [vmem:[%s922_s5 + $0x8] sm:$0x3]  ;;  %vm90_vm2 = vcmask 121856  }
   0x2   :  { %v726_v1 = vunpack.c.h.bf16 %v581_v0  ;;  %v728_v2 = vunpack.c.l.bf16 %v581_v0  ;;  %s683_s26 = smov 112   ;;  %s684_s27 = smov 127   ;;  %675 = vset.pattern.permute.xlu0 %v687_v9  ;;  %676 = vset.pattern.permute.xlu1 %v687_v9  ;;  %v25_v10 = vld [vmem:[%s921_s2] sm:$0xff]  ;;  %v51_v12 = vshrl.u32 %v50_v11, 7  ;;  %v33_v20 = vld [vmem:[%s922_s5 + $0xe] sm:$0x3] }
   0x3   :  { %s685_s28 = smov 113   ;;  %s686_s29 = smov 111   ;;  %v27_v18 = vld [vmem:[%s922_s5 + $0x2] sm:$0x3]  ;;  %v29_v19 = vld [vmem:[%s922_s5 + $0x6] sm:$0x3] }
   0x4   :  { %v338_v3 = vcombine.high %v726_v1, %v726_v1  ;;  %v38_v4 = vcombine.high %v728_v2, %v728_v2  ;;  %v52_v14 = vsub.s32 0, %v51_v12  ;;  %v56_v15 = vsub.s32 1, %v51_v12  ;;  %v26_v22 = vld [vmem:[%s922_s5] sm:$0x3]  ;;  %v31_v23 = vld [vmem:[%s922_s5 + $0xa] sm:$0x3] }
   0x5   :  { %v28_v24 = vld [vmem:[%s922_s5 + $0x4] sm:$0x3]  ;;  %v32_v29 = vld [vmem:[%s922_s5 + $0xc] sm:$0x3]  ;;  %v34_v38 = vld [vmem:[%s922_s5 + $0x10] sm:$0x3] }
   0x6   :  { %v605_v5 = vpack.i.bf16 %v726_v1, %v338_v3  ;;  %v595_v6 = vpack.i.bf16 %v728_v2, %v38_v4  ;;  %v640_v7 = vpack.i.bf16 %v38_v4, %v728_v2  ;;  %v650_v8 = vpack.i.bf16 %v338_v3, %v726_v1 }
   0x7   :  { %v135_v16 = vrot.slane %v30_v13, %v52_v14  ;;  %v139_v17 = vrot.slane %v30_v13, %v56_v15  ;;  %v76_v25 = vrot.slane %v27_v18, %v52_v14  ;;  %v122_v26 = vrot.slane %v29_v19, %v52_v14 }
   0x8   :  { %606 = vrot.lane.b32.xlu1 %v605_v5, %s679_s23  ;;  %596 = vrot.lane.b32.xlu0 %v595_v6, %s679_s23  ;;  %v762_v27 = vrot.slane %v33_v20, %v52_v14  ;;  %v764_v28 = vrot.slane %v33_v20, %v56_v15  ;;  %v769_v30 = vrot.slane %v26_v22, %v56_v15  ;;  %vm44_vm3 = vcmask 138240  }
   0x9   :  { %v140_v21 = vcombine.low %v135_v16, %v139_v17  ;;  %v80_v31 = vrot.slane %v27_v18, %v56_v15  ;;  %v777_v34 = vrot.slane %v31_v23, %v52_v14  ;;  %v779_v35 = vrot.slane %v31_v23, %v56_v15 }
   0xa   :  { %v781_v36 = vrot.slane %v28_v24, %v56_v15  ;;  %v126_v37 = vrot.slane %v29_v19, %v56_v15  ;;  %v786_v41 = vrot.slane %v26_v22, %v52_v14  ;;  %v788_v42 = vrot.slane %v28_v24, %v52_v14 }
   0xb   :  { %v772_v32 = vmul.f32 %v140_v21, %v728_v2  ;;  %v775_v33 = vmul.f32 %v726_v1, %v140_v21  ;;  %v790_v43 = vrot.slane %v32_v29, %v52_v14  ;;  %v792_v44 = vrot.slane %v32_v29, %v56_v15 }
   0xc   :  { %611 = vrot.lane.b32.xlu1 %v605_v5, %s680_s24  ;;  %601 = vrot.lane.b32.xlu0 %v595_v6, %s680_s24  ;;  %v794_v49 = vrot.slane %v34_v38, %v56_v15  ;;  %v800_v52 = vrot.slane %v34_v38, %v52_v14  ;;  %vm262_vm4 = vcmask 1043456   ;;  %vm193_vm5 = vcmask 916480  }
   0xd   :  { %v248_v50 = vcombine.high %v772_v32, %v772_v32  ;;  %v441_v51 = vcombine.high %v775_v33, %v775_v33  ;;  %vm147_vm6 = vcmask 1039360   ;;  %vm170_vm7 = vcmask 924672  }
   0xe   :  { %vm216_vm8 = vcmask 908288   ;;  %vm286_vm9 = vcmask 1041408   ;;  %vm282_vm10 = vcmask 293888  }
  0x10   :  { %621 = vrot.lane.b32.xlu1 %v595_v6, %s681_s0  ;;  %616 = vrot.lane.b32.xlu0 %v595_v6, %s682_s25 }
  0x14   :  { %631 = vrot.lane.b32.xlu1 %v605_v5, %s681_s0  ;;  %626 = vrot.lane.b32.xlu0 %v605_v5, %s682_s25 }
  0x18   :  { %641 = vrot.lane.b32.xlu1 %v640_v7, %s683_s26  ;;  %636 = vrot.lane.b32.xlu0 %v640_v7, %s684_s27 }
  0x1c   :  { %651 = vrot.lane.b32.xlu1 %v650_v8, %s683_s26  ;;  %646 = vrot.lane.b32.xlu0 %v650_v8, %s684_s27 }
  0x20   :  { %661 = vrot.lane.b32.xlu1 %v650_v8, %s685_s28  ;;  %656 = vrot.lane.b32.xlu0 %v640_v7, %s685_s28 }
  0x24   :  { %671 = vrot.lane.b32.xlu1 %v650_v8, %s686_s29  ;;  %666 = vrot.lane.b32.xlu0 %v640_v7, %s686_s29 }
  0x28   :  { %279 = vperm.xlu0 %675, %v25_v10  }
  0x7a   :  { %v607_v39 = vpop.permute.xlu1 %606  ;;  %v597_v40 = vpop.permute.xlu0 %596 }
  0x7b   :  { %v609_v45 = vunpack.i.h.bf16 %v607_v39  ;;  %v608_v46 = vunpack.i.l.bf16 %v607_v39  ;;  %v599_v47 = vunpack.i.h.bf16 %v597_v40  ;;  %v598_v48 = vunpack.i.l.bf16 %v597_v40 }
  0x7d   :  { %v355_v53 = vsel %vm67_vm0, %v609_v45, %v608_v46  ;;  %v358_v54 = vsel %vm67_vm0, %v608_v46, %v609_v45  ;;  %v68_v55 = vsel %vm67_vm0, %v599_v47, %v598_v48  ;;  %v71_v56 = vsel %vm67_vm0, %v598_v48, %v599_v47 }
  0x7e   :  { %v806_v57 = vmul.f32 %v358_v54, %v76_v25  ;;  %v83_v58 = vmul.f32 %v76_v25, %v71_v56  ;;  %v612_v59 = vpop.permute.xlu1 %611  ;;  %v602_v60 = vpop.permute.xlu0 %601  ;;  %v84_v61 = vmul.f32 %v80_v31, %v68_v55  ;;  %v808_v62 = vmul.f32 %v355_v53, %v80_v31 }
  0x7f   :  { %v614_v63 = vunpack.i.h.bf16 %v612_v59  ;;  %v613_v0 = vunpack.i.l.bf16 %v612_v59  ;;  %v604_v1 = vunpack.i.h.bf16 %v602_v60  ;;  %v603_v2 = vunpack.i.l.bf16 %v602_v60 }
  0x80   :  { %v238_v3 = vrot.slane %v84_v61, 4  ;;  %v237_v4 = vrot.slane %v83_v58, 4  ;;  %v431_v5 = vrot.slane %v808_v62, 4  ;;  %v430_v6 = vrot.slane %v806_v57, 4 }
  0x81   :  { %v377_v7 = vsel %vm113_vm1, %v614_v63, %v613_v0  ;;  %v380_v8 = vsel %vm113_vm1, %v613_v0, %v614_v63  ;;  %v114_v9 = vsel %vm113_vm1, %v604_v1, %v603_v2  ;;  %v117_v10 = vsel %vm113_vm1, %v603_v2, %v604_v1 }
  0x82   :  { %v816_v11 = vmul.f32 %v380_v8, %v122_v26  ;;  %v129_v12 = vmul.f32 %v122_v26, %v117_v10  ;;  %v622_v13 = vpop.permute.xlu1 %621  ;;  %v617_v14 = vpop.permute.xlu0 %616  ;;  %v130_v15 = vmul.f32 %v126_v37, %v114_v9  ;;  %v382_v16 = vmul.f32 %v377_v7, %v126_v37 }
  0x83   :  { %v624_v17 = vunpack.i.h.bf16 %v622_v13  ;;  %v623_v18 = vunpack.i.l.bf16 %v622_v13  ;;  %v619_v19 = vunpack.i.h.bf16 %v617_v14  ;;  %v618_v20 = vunpack.i.l.bf16 %v617_v14 }
  0x84   :  { %v244_v21 = vrot.slane %v130_v15, 4  ;;  %v243_v22 = vrot.slane %v129_v12, 4  ;;  %v437_v23 = vrot.slane %v382_v16, 4  ;;  %v436_v24 = vrot.slane %v816_v11, 4 }
  0x85   :  { %v91_v25 = vsel %vm90_vm2, %v624_v17, %v623_v18  ;;  %v94_v29 = vsel %vm90_vm2, %v623_v18, %v624_v17  ;;  %v45_v26 = vsel %vm44_vm3, %v619_v19, %v618_v20  ;;  %v48_v31 = vsel %vm44_vm3, %v618_v20, %v619_v19 }
  0x86   :  { %v632_v38 = vpop.permute.xlu1 %631  ;;  %v627_v39 = vpop.permute.xlu0 %626  ;;  %v61_v37 = vmul.f32 %v769_v30, %v45_v26  ;;  %v107_v40 = vmul.f32 %v781_v36, %v91_v25  ;;  %v60_v45 = vmul.f32 %v786_v41, %v48_v31  ;;  %v106_v46 = vmul.f32 %v788_v42, %v94_v29 }
  0x87   :  { %v634_v47 = vunpack.i.h.bf16 %v632_v38  ;;  %v633_v48 = vunpack.i.l.bf16 %v632_v38  ;;  %v629_v53 = vunpack.i.h.bf16 %v627_v39  ;;  %v628_v54 = vunpack.i.l.bf16 %v627_v39 }
  0x88   :  { %v264_v55 = vsel %vm262_vm4, %v61_v37, %v238_v3  ;;  %v266_v56 = vsel %vm262_vm4, %v107_v40, %v244_v21  ;;  %v263_v58 = vsel %vm262_vm4, %v60_v45, %v237_v4  ;;  %v265_v59 = vsel %vm262_vm4, %v106_v46, %v243_v22 }
  0x89   :  { %v366_v60 = vsel %vm90_vm2, %v634_v47, %v633_v48  ;;  %v369_v61 = vsel %vm90_vm2, %v633_v48, %v634_v47  ;;  %v344_v62 = vsel %vm44_vm3, %v629_v53, %v628_v54  ;;  %v347_v63 = vsel %vm44_vm3, %v628_v54, %v629_v53 }
  0x8a   :  { %v642_v0 = vpop.permute.xlu1 %641  ;;  %v637_v1 = vpop.permute.xlu0 %636  ;;  %v272_v2 = vpack.c.bf16 %v266_v56, %v264_v55  ;;  %v271_v7 = vpack.c.bf16 %v265_v59, %v263_v58  ;;  %v349_v3 = vmul.f32 %v344_v62, %v769_v30  ;;  %v371_v8 = vmul.f32 %v366_v60, %v781_v36 }
  0x8b   :  { %v644_v9 = vunpack.i.h.bf16 %v642_v0  ;;  %v643_v4 = vunpack.i.l.bf16 %v642_v0  ;;  %v639_v10 = vunpack.i.h.bf16 %v637_v1  ;;  %v638_v12 = vunpack.i.l.bf16 %v637_v1 }
  0x8c   :  { %293 = vmatprep.subr.bf16.mxu0 %v272_v2  ;;  %v456_v13 = vsel %vm262_vm4, %v349_v3, %v431_v5  ;;  %v458_v14 = vsel %vm262_vm4, %v371_v8, %v437_v23  ;;  %v348_v15 = vmul.f32 %v347_v63, %v786_v41  ;;  %v370_v16 = vmul.f32 %v369_v61, %v788_v42 }
  0x8d   :  { %v194_v17 = vsel %vm193_vm5, %v643_v4, %v644_v9  ;;  %v198_v30 = vsel %vm193_vm5, %v644_v9, %v643_v4  ;;  %v148_v36 = vsel %vm147_vm6, %v638_v12, %v639_v10  ;;  %v152_v18 = vsel %vm147_vm6, %v639_v10, %v638_v12  ;;  %294 = vmatpush1.bf16.msra.mxu0 %v271_v7 }
  0x8e   :  { %v210_v19 = vmul.f32 %v762_v27, %v194_v17  ;;  %v211_v5 = vmul.f32 %v764_v28, %v198_v30  ;;  %v164_v20 = vmul.f32 %v777_v34, %v148_v36  ;;  %v165_v41 = vmul.f32 %v779_v35, %v152_v18  ;;  %v652_v21 = vpop.permute.xlu1 %651  ;;  %v647_v42 = vpop.permute.xlu0 %646 }
  0x8f   :  { %v654_v22 = vunpack.i.h.bf16 %v652_v21  ;;  %v653_v23 = vunpack.i.l.bf16 %v652_v21  ;;  %v649_v25 = vunpack.i.h.bf16 %v647_v42  ;;  %v648_v29 = vunpack.i.l.bf16 %v647_v42 }
  0x90   :  { %v258_v26 = vrot.slane %v210_v19, 4  ;;  %v259_v31 = vrot.slane %v211_v5, 4  ;;  %v252_v38 = vrot.slane %v164_v20, 4  ;;  %v253_v39 = vrot.slane %v165_v41, 4 }
  0x91   :  { %v410_v37 = vsel %vm193_vm5, %v653_v23, %v654_v22  ;;  %v414_v40 = vsel %vm193_vm5, %v654_v22, %v653_v23  ;;  %v388_v45 = vsel %vm147_vm6, %v648_v29, %v649_v25  ;;  %v392_v46 = vsel %vm147_vm6, %v649_v25, %v648_v29 }
  0x92   :  { %v415_v47 = vmul.f32 %v410_v37, %v762_v27  ;;  %v416_v48 = vmul.f32 %v414_v40, %v764_v28  ;;  %v393_v53 = vmul.f32 %v388_v45, %v777_v34  ;;  %v394_v54 = vmul.f32 %v392_v46, %v779_v35  ;;  %v662_v55 = vpop.permute.xlu1 %661  ;;  %v657_v56 = vpop.permute.xlu0 %656 }
  0x93   :  { %v464_v58 = vpack.c.bf16 %v458_v14, %v456_v13  ;;  %v455_v59 = vsel %vm262_vm4, %v348_v15, %v430_v6  ;;  %v457_v60 = vsel %vm262_vm4, %v370_v16, %v436_v24  ;;  %v664_v61 = vunpack.i.h.bf16 %v662_v55 }
  0x94   :  { %v451_v62 = vrot.slane %v415_v47, 4  ;;  %v452_v27 = vrot.slane %v416_v48, 4  ;;  %v445_v63 = vrot.slane %v393_v53, 4  ;;  %v446_v28 = vrot.slane %v394_v54, 4 }
  0x95   :  { %475 = vmatprep.subr.bf16.mxu1 %v464_v58  ;;  %v463_v34 = vpack.c.bf16 %v457_v60, %v455_v59  ;;  %v663_v0 = vunpack.i.l.bf16 %v662_v55  ;;  %v659_v35 = vunpack.i.h.bf16 %v657_v56  ;;  %v658_v1 = vunpack.i.l.bf16 %v657_v56 }
  0x96   :  { %v672_v2 = vpop.permute.xlu1 %671  ;;  %v667_v7 = vpop.permute.xlu0 %666  ;;  %v268_v57 = vsel %vm262_vm4, %v248_v50, %v253_v39  ;;  %v460_v6 = vsel %vm262_vm4, %v441_v51, %v446_v28  ;;  %v267_v11 = vsel %vm262_vm4, %v772_v32, %v252_v38  ;;  %v459_v24 = vsel %vm262_vm4, %v775_v33, %v445_v63  ;;  %v24_v39 = vld [vmem:[%s923_s1] sm:$0xf] }
  0x97   :  { %476 = vmatpush1.bf16.msra.mxu1 %v463_v34  ;;  %v399_v3 = vsel %vm170_vm7, %v663_v0, %v664_v61  ;;  %v403_v8 = vsel %vm170_vm7, %v664_v61, %v663_v0  ;;  %v171_v9 = vsel %vm170_vm7, %v658_v1, %v659_v35  ;;  %v175_v50 = vsel %vm170_vm7, %v659_v35, %v658_v1 }
  0x98   :  { %v404_v4 = vmul.f32 %v399_v3, %v790_v43  ;;  %v405_v10 = vmul.f32 %v403_v8, %v792_v44  ;;  %v187_v51 = vmul.f32 %v790_v43, %v171_v9  ;;  %v188_v32 = vmul.f32 %v792_v44, %v175_v50 }
  0x99   :  { %v674_v12 = vunpack.i.h.bf16 %v672_v2  ;;  %v673_v13 = vunpack.i.l.bf16 %v672_v2  ;;  %v669_v33 = vunpack.i.h.bf16 %v667_v7  ;;  %v668_v14 = vunpack.i.l.bf16 %v667_v7 }
  0x9a   :  { %v270_v15 = vsel %vm262_vm4, %v188_v32, %v259_v31  ;;  %v462_v16 = vsel %vm262_vm4, %v405_v10, %v452_v27  ;;  %v269_v17 = vsel %vm262_vm4, %v187_v51, %v258_v26  ;;  %v461_v30 = vsel %vm262_vm4, %v404_v4, %v451_v62  ;;  %v543_v10 = vld [vmem:[%s924_s3] sm:$0xff] }
  0x9b   :  { %v425_v36 = vsel %vm216_vm8, %v674_v12, %v673_v13  ;;  %v221_v18 = vsel %vm216_vm8, %v669_v33, %v668_v14  ;;  %v274_v19 = vpack.c.bf16 %v270_v15, %v268_v57  ;;  %v466_v43 = vpack.c.bf16 %v462_v16, %v460_v6 }
  0x9c   :  { %v427_v44 = vmul.f32 %v425_v36, %v794_v49  ;;  %v234_v5 = vmul.f32 %v794_v49, %v221_v18  ;;  %v273_v20 = vpack.c.bf16 %v269_v17, %v267_v11  ;;  %v465_v41 = vpack.c.bf16 %v461_v30, %v459_v24 }
  0x9d   :  { %295 = vmatprep.subr.bf16.mxu0 %v274_v19  ;;  %477 = vmatprep.subr.bf16.mxu1 %v466_v43  ;;  %v217_v21 = vsel %vm216_vm8, %v668_v14, %v669_v33  ;;  %v421_v42 = vsel %vm216_vm8, %v673_v13, %v674_v12  ;;  %v545_v12 = vld [vmem:[%s925_s4] sm:$0xff] }
  0x9e   :  { %296 = vmatpush1.bf16.msra.mxu0 %v273_v20  ;;  %478 = vmatpush1.bf16.msra.mxu1 %v465_v41  ;;  %v276_v22 = vpack.c.bf16 %v234_v5, %v234_v5  ;;  %v468_v23 = vpack.c.bf16 %v427_v44, %v427_v44  ;;  %v233_v25 = vmul.f32 %v800_v52, %v217_v21 }
  0x9f   :  { %v426_v29 = vmul.f32 %v421_v42, %v800_v52 }
  0xa0   :  { %579 = vmatprep.subr.msk.bf16.mxu0 %vm286_vm9, %v276_v22  ;;  %582 = vmatprep.subr.msk.bf16.mxu1 %vm286_vm9, %v468_v23  ;;  %v275_v49 = vpack.c.bf16 %v233_v25, %v233_v25 }
  0xa1   :  { %v467_v26 = vpack.c.bf16 %v426_v29, %v426_v29 }
  0xa2   :  { %v288_v31 = vsel %vm286_vm9, %v275_v49, 0 }
  0xa3   :  { %298 = vmatpush1.bf16.msra.mxu0 %v288_v31  ;;  %v470_v38 = vsel %vm286_vm9, %v467_v26, 0 }
  0xa4   :  { %480 = vmatpush1.bf16.msra.mxu1 %v470_v38 }
  0xa6   :  { %580 = vmatmul.mubr.msk.bf16.vlgmr.msra.gmra.mrb[0].mxu0 %vm282_vm10, %v24_v39 }
  0xa7   :  { %583 = vmatmul.mubr.msk.bf16.vlgmr.msra.gmra.mrb[0].mxu1 %vm282_vm10, %v24_v39  ;;  %v280_v52 = vpop.permute.xlu0 %279 }
 0x179   :  { %v327_v37 = vpop.f32.mrb[0].mxu0 }
 0x17a   :  { %v328_v40 = vadd.f32 %v327_v37, %v280_v52  ;;  %v509_v45 = vpop.f32.mrb[0].mxu1  ;;  %v329_v46 = vpop.f32.mrb[1].mxu0 }
 0x17b   :  { %v510_v47 = vadd.f32 %v509_v45, %v280_v52  ;;  %v330_v48 = vadd.f32 %v329_v46, %v280_v52  ;;  %v511_v53 = vpop.f32.mrb[1].mxu1  ;;  %v331_v54 = vpop.f32.mrb[2].mxu0 }
 0x17c   :  { %v512_v55 = vadd.f32 %v511_v53, %v280_v52  ;;  %v513_v56 = vpop.f32.mrb[2].mxu1  ;;  %v332_v58 = vpop.f32.mrb[3].mxu0 }
 0x17d   :  { %v514_v59 = vpop.f32.mrb[3].mxu1  ;;  %v516_v60 = vadd.f32 %v330_v48, %v328_v40 }
 0x17e   :  { %v519_v61 = vadd.f32 %v512_v55, %v510_v47 }
 0x17f   :  { %517 = vadd.xlane.f32.xlu1 %v516_v60 }
 0x180   :  { %520 = vadd.xlane.f32.xlu0 %v519_v61 }
 0x20c   :  { %v518_v62 = vpop.xlane.xlu1 %517 }
 0x20d   :  { %v521_v27 = vpop.xlane.xlu0 %520 }
 0x20e   :  { %v522_v63 = vadd.f32 %v521_v27, %v518_v62 }
 0x210   :  { %v523_v28 = vmul.f32 0.001953125, %v522_v63 }
 0x212   :  { %v532_v34 = vsub.f32 %v510_v47, %v523_v28  ;;  %v533_v0 = vsub.f32 %v512_v55, %v523_v28  ;;  %v524_v35 = vsub.f32 %v328_v40, %v523_v28  ;;  %v525_v1 = vsub.f32 %v330_v48, %v523_v28 }
 0x214   :  { %v534_v2 = vmul.f32 %v532_v34, %v532_v34  ;;  %v535_v7 = vmul.f32 %v533_v0, %v533_v0  ;;  %v526_v57 = vmul.f32 %v524_v35, %v524_v35  ;;  %v527_v6 = vmul.f32 %v525_v1, %v525_v1 }
 0x216   :  { %v536_v11 = vadd.f32 %v535_v7, %v534_v2  ;;  %v528_v24 = vadd.f32 %v527_v6, %v526_v57 }
 0x218   :  { %537 = vadd.xlane.f32.xlu0 %v536_v11  ;;  %529 = vadd.xlane.f32.xlu1 %v528_v24 }
 0x2a5   :  { %v538_v3 = vpop.xlane.xlu0 %537  ;;  %v530_v8 = vpop.xlane.xlu1 %529 }
 0x2a6   :  { %v539_v9 = vadd.f32 %v538_v3, %v530_v8 }
 0x2a8   :  { %v540_v50 = vmul.f32 0.001953125, %v539_v9 }
 0x2aa   :  { %v541_v4 = vadd.f32 1e-05, %v540_v50 }
 0x2ac   :  { %677 = vrsqrt.f32 %v541_v4 }
 0x2b6   :  { %v678_v51 = vpop.eup %677 }
 0x2b7   :  { %v544_v32 = vmul.f32 %v678_v51, %v543_v10 }
 0x2b9   :  { %550 = vperm.xlu1 %676, %v544_v32   ;;  %v546_v13 = vmul.f32 %v544_v32, %v523_v28 }
 0x2bb   :  { %v547_v33 = vsub.f32 %v545_v12, %v546_v13 }
 0x2bd   :  { %557 = vperm.xlu0 %675, %v547_v33  }
 0x338   :  { %v551_v14 = vpop.permute.xlu1 %550 }
 0x339   :  { %v553_v15 = vmul.f32 %v551_v14, %v328_v40  ;;  %v554_v16 = vmul.f32 %v551_v14, %v330_v48  ;;  %v566_v17 = vmul.f32 %v551_v14, %v510_v47  ;;  %v567_v30 = vmul.f32 %v551_v14, %v512_v55 }
 0x33c   :  { %v558_v36 = vpop.permute.xlu0 %557 }
 0x33d   :  { %v560_v18 = vadd.f32 %v558_v36, %v553_v15  ;;  %v561_v19 = vadd.f32 %v558_v36, %v554_v16  ;;  %v568_v43 = vadd.f32 %v566_v17, %v558_v36  ;;  %v569_v44 = vadd.f32 %v567_v30, %v558_v36 }
 0x33f   :  { %v562_v5 = vmax.f32 %v560_v18, 0.0  ;;  %v563_v20 = vmax.f32 %v561_v19, 0.0  ;;  %v570_v41 = vmax.f32 %v568_v43, 0.0  ;;  %v571_v21 = vmax.f32 %v569_v44, 0.0 }
 0x341   :  { %564 = vst [vmem:[%s926_s6] sm:$0xff] %v562_v5  ;;  %565 = vst [vmem:[%s926_s6 + $0x8] sm:$0xff] %v563_v20 }
 0x342   :  { %584 = vst [vmem:[%s926_s6 + $0x10] sm:$0xff] %v570_v41  ;;  %585 = vst [vmem:[%s926_s6 + $0x18] sm:$0xff] %v571_v21 }

</bundles_post_ra>
